<compile_context>
chip_gen: v6e
topology: v6e:2x2x1
jax: 0.10.0
libtpu: 0.0.40
codegen_flags: <defaults>
</compile_context>

<pallas_src>
import functools

import jax
import jax.numpy as jnp
from jax import lax
from jax.experimental import pallas as pl
from jax.experimental.pallas import tpu as pltpu


def _ls_ce_kernel(x_ref, tgt_ref, o_ref, m_ref=None, s_ref=None, *,
                  smoothing, n_rows, n_cols, num_inner, tc, num_c_chunks):
    o = pl.program_id(0)          # parallel (megacore) row axis
    i = pl.program_id(1)          # row-tile reduction axis
    j = pl.program_id(2)          # class-chunk reduction axis (innermost)

    multi_chunk = num_c_chunks > 1          # static Python bool
    confidence = 1.0 - smoothing
    smooth_scale = smoothing / n_cols       # python-float constant

    @pl.when(jnp.logical_and(i == 0, j == 0))
    def _():
        o_ref[...] = jnp.zeros_like(o_ref)

    logits = x_ref[...].astype(jnp.float32)          # (tm, tc)
    tm = logits.shape[0]

    # Lane-dense target block -> sublane (column) vector via one tiny XLU
    # relayout (replaces the old narrow (tm, 1) per-step DMA).
    tgt_lane = tgt_ref[...].reshape(1, tm)           # (1,1,tm) -> (1,tm): free
    tgt_col = jnp.transpose(tgt_lane, (1, 0))        # (tm, 1) int32
    tgt_local = tgt_col - j * tc                     # fold chunk offset (scalar)

    col = lax.broadcasted_iota(jnp.int32, (tm, tc), 1)

    # Column-validity mask only for a ragged last class chunk (static branch).
    if n_cols % tc != 0:
        valid_c = col < (n_cols - j * tc)
        logits_max_in = jnp.where(valid_c, logits, -jnp.inf)   # for max / exp
        logits_sum_in = jnp.where(valid_c, logits, 0.0)        # for plain sums
    else:
        logits_max_in = logits
        logits_sum_in = logits

    # Row validity: partial last row tile and any clamped overflow tile.
    row0 = (o * num_inner + i) * tm
    rmask = (row0 + lax.broadcasted_iota(jnp.int32, (tm, 1), 0)) < n_rows

    # Linear terms (target logit + plain sum) accumulate directly every chunk.
    logit_t = jnp.sum(jnp.where(col == tgt_local, logits_sum_in, 0.0),
                      axis=-1, keepdims=True)                  # (tm, 1)
    sum_logits = jnp.sum(logits_sum_in, axis=-1, keepdims=True)

    t_sum = jnp.sum(jnp.where(rmask, logit_t, 0.0))
    z_sum = jnp.sum(jnp.where(rmask, sum_logits, 0.0))
    delta = -(confidence * t_sum + smooth_scale * z_sum)

    m_chunk = jnp.max(logits_max_in, axis=-1, keepdims=True)   # (tm, 1)

    if not multi_chunk:
        # Whole class dim resident: direct stable logsumexp, no scratch.
        lse = m_chunk + jnp.log(
            jnp.sum(jnp.exp(logits_max_in - m_chunk), axis=-1, keepdims=True))
        o_ref[...] += delta + jnp.sum(jnp.where(rmask, lse, 0.0))
    else:
        # Online logsumexp carry across class chunks (flash-style rescale).
        @pl.when(j == 0)
        def _():
            m_ref[...] = jnp.full(m_ref.shape, -jnp.inf, dtype=jnp.float32)
            s_ref[...] = jnp.zeros(s_ref.shape, dtype=jnp.float32)

        m_prev = m_ref[...]
        s_prev = s_ref[...]
        m_new = jnp.maximum(m_prev, m_chunk)
        s_new = s_prev * jnp.exp(m_prev - m_new) + jnp.sum(
            jnp.exp(logits_max_in - m_new), axis=-1, keepdims=True)
        m_ref[...] = m_new
        s_ref[...] = s_new

        o_ref[...] += delta

        @pl.when(j == num_c_chunks - 1)
        def _():
            lse = m_new + jnp.log(s_new)
            o_ref[...] += jnp.sum(jnp.where(rmask, lse, 0.0))


def _round_up(v, m):
    return (v + m - 1) // m * m


def _vmem_total_bytes():
    """Generation-aware VMEM capacity; conservative 64 MiB (v7x) fallback."""
    try:
        return int(pltpu.get_tpu_info().vmem_capacity_bytes)
    except Exception:
        pass
    try:
        kind = jax.devices()[0].device_kind.lower()
        return 64 * 2**20 if "v7" in kind else 128 * 2**20
    except Exception:
        return 64 * 2**20


def _num_parallel_row_blocks(num_tiles):
    """2 output/row partitions only on 2-TensorCore parts (v7x)."""
    if num_tiles < 2:
        return 1
    try:
        kind = jax.devices()[0].device_kind.lower()
    except Exception:
        kind = ""
    return 2 if "v7" in kind else 1


def _choose_blocks(n_rows, c, itemsize, tm=None, tc=None):
    vmem_total = _vmem_total_bytes()
    vmem_limit = min(vmem_total * 3 // 4, 64 * 2**20)
    # Budget for the streamed logits block: double-buffered input + ~3 f32
    # temporaries (lane-padded) + a handful of (tm, 1) column temporaries.
    block_budget = min(int(vmem_limit * 0.6), 28 * 2**20)

    def denom_for(tc_):
        c_pad = _round_up(max(tc_, 1), 128)
        return c_pad * (2 * itemsize + 12) + 8 * 128 * 4

    if tc is None:
        if c <= 256 or 8 * denom_for(c) <= block_budget:
            tc = c                        # whole class dim resident (common)
        else:
            tc = 2048                     # vocab-scale C: lane-dense chunks
    else:
        tc = min(int(tc), c)
        if tc != c and tc % 128 != 0:
            raise ValueError("tc must equal C or be a multiple of 128")

    n_row_pad = _round_up(max(n_rows, 1), 8)
    if tm is None:
        tm = (block_budget // denom_for(tc)) // 8 * 8
        tm = max(8, min(tm, 8192, n_row_pad))
    else:
        tm = max(8, (int(tm) // 8) * 8)
        tm = min(tm, n_row_pad)
    return int(tm), int(tc), int(vmem_limit)


def label_smoothing_cross_entropy(x, target, smoothing=0.1, *, tm=None, tc=None):
    """x: (N, C) float logits (f32 or bf16); target: (N,) int labels. Scalar f32."""
    N, C = x.shape
    itemsize = jnp.dtype(x.dtype).itemsize
    tm, tc, vmem_limit = _choose_blocks(N, C, itemsize, tm=tm, tc=tc)

    num_c_chunks = pl.cdiv(C, tc)
    num_tiles = pl.cdiv(N, tm)
    num_outer = _num_parallel_row_blocks(num_tiles)
    num_inner = pl.cdiv(num_tiles, num_outer)

    # Targets: tiny -> pad + lay out lane-dense as (T, 1, tm) int32.
    t_total = num_outer * num_inner * tm
    tgt = target.astype(jnp.int32)
    if t_total != N:
        tgt = jnp.pad(tgt, (0, t_total - N))
    tgt = tgt.reshape(num_outer * num_inner, 1, tm)

    kernel = functools.partial(
        _ls_ce_kernel,
        smoothing=float(smoothing),
        n_rows=int(N),
        n_cols=int(C),
        num_inner=int(num_inner),
        tc=int(tc),
        num_c_chunks=int(num_c_chunks),
    )

    # Clamp overflow row tiles (only exist when num_outer*num_inner > num_tiles);
    # their rows are fully masked in-kernel so they contribute exactly zero.
    if num_outer * num_inner == num_tiles:
        x_index = lambda o, i, j: (o * num_inner + i, j)
    else:
        x_index = lambda o, i, j: (jnp.minimum(o * num_inner + i, num_tiles - 1), j)
    t_index = lambda o, i, j: (o * num_inner + i, 0, 0)

    scratch = []
    if num_c_chunks > 1:          # online-logsumexp carry only when chunking C
        scratch = [pltpu.VMEM((tm, 1), jnp.float32),
                   pltpu.VMEM((tm, 1), jnp.float32)]

    partial_sums = pl.pallas_call(
        kernel,
        out_shape=jax.ShapeDtypeStruct((num_outer, 8, 128), jnp.float32),
        grid_spec=pltpu.PrefetchScalarGridSpec(
            num_scalar_prefetch=0,
            grid=(num_outer, num_inner, num_c_chunks),
            in_specs=[
                pl.BlockSpec((tm, tc), x_index),
                pl.BlockSpec((1, 1, tm), t_index),
            ],
            out_specs=pl.BlockSpec((1, 8, 128), lambda o, i, j: (o, 0, 0)),
            scratch_shapes=scratch,
        ),
        compiler_params=pltpu.CompilerParams(
            dimension_semantics=("parallel", "arbitrary", "arbitrary"),
            vmem_limit_bytes=vmem_limit,
        ),
    )(x, tgt)

    # Every element of each (1, 8, 128) block holds that block's running sum.
    return jnp.sum(partial_sums[:, 0, 0]) / jnp.float32(N)


def _reference(x, target, smoothing=0.1):
    confidence = 1.0 - smoothing
    logprobs = jax.nn.log_softmax(x.astype(jnp.float32), axis=1)
    nll = -jnp.take_along_axis(logprobs, target[:, None].astype(jnp.int32), axis=1)[:, 0]
    smooth = -jnp.mean(logprobs, axis=-1)
    return jnp.mean(confidence * nll + smoothing * smooth)


if __name__ == "__main__":
    key = jax.random.PRNGKey(0)

    # 1) Basic small shape; N not a multiple of 8 -> partial row tile (no jnp.pad of x).
    kx, kt = jax.random.split(key)
    N, C = 10, 32
    x = jax.random.normal(kx, (N, C), dtype=jnp.float32)
    t = jax.random.randint(kt, (N,), 0, C, dtype=jnp.int32)
    loss = jax.block_until_ready(label_smoothing_cross_entropy(x, t, smoothing=0.1))
    ref = _reference(x, t, smoothing=0.1)
    assert jnp.allclose(loss, ref, rtol=1e-5, atol=1e-5), (loss, ref)

    # 2) Forced small row tile -> multi-step row reduction (+ clamped overflow
    #    tile if running on a 2-core part).
    kx2, kt2 = jax.random.split(jax.random.PRNGKey(0))
    N2, C2 = 100, 40
    x2 = jax.random.normal(kx2, (N2, C2), dtype=jnp.float32)
    t2 = jax.random.randint(kt2, (N2,), 0, C2, dtype=jnp.int32)
    loss2 = jax.block_until_ready(
        label_smoothing_cross_entropy(x2, t2, smoothing=0.1, tm=16))
    ref2 = _reference(x2, t2, smoothing=0.1)
    assert jnp.allclose(loss2, ref2, rtol=1e-5, atol=1e-5), (loss2, ref2)

    # 3) Forced class chunking (C axis + online logsumexp), ragged last chunk
    #    and ragged last row tile.
    kx3, kt3 = jax.random.split(jax.random.PRNGKey(1))
    N3, C3 = 20, 300
    x3 = jax.random.normal(kx3, (N3, C3), dtype=jnp.float32)
    t3 = jax.random.randint(kt3, (N3,), 0, C3, dtype=jnp.int32)
    loss3 = jax.block_until_ready(
        label_smoothing_cross_entropy(x3, t3, smoothing=0.1, tm=8, tc=128))
    ref3 = _reference(x3, t3, smoothing=0.1)
    assert jnp.allclose(loss3, ref3, rtol=1e-5, atol=1e-5), (loss3, ref3)

    # 4) bf16 fast path: no wrapper-side upcast (halved HBM traffic); compute in f32.
    kx4, kt4 = jax.random.split(jax.random.PRNGKey(2))
    N4, C4 = 64, 128
    x4 = jax.random.normal(kx4, (N4, C4), dtype=jnp.float32).astype(jnp.bfloat16)
    t4 = jax.random.randint(kt4, (N4,), 0, C4, dtype=jnp.int32)
    loss4 = jax.block_until_ready(label_smoothing_cross_entropy(x4, t4, smoothing=0.1))
    ref4 = _reference(x4, t4, smoothing=0.1)
    assert jnp.allclose(loss4, ref4, rtol=1e-5, atol=1e-4), (loss4, ref4)

    print("KERNEL_OK")
</pallas_src>

<mosaic_0001>
module attributes {stable_mosaic.version = 11 : i64} {
  func.func @_ls_ce_kernel(%arg0: i32, %arg1: i32, %arg2: i32, %arg3: memref<16x32xf32, #tpu.memory_space<vmem>>, %arg4: memref<1x1x16xi32, #tpu.memory_space<vmem>>, %arg5: memref<1x8x128xf32, #tpu.memory_space<vmem>>) attributes {dimension_semantics = [#tpu.dimension_semantics<parallel>, #tpu.dimension_semantics<arbitrary>, #tpu.dimension_semantics<arbitrary>], iteration_bounds = array<i64: 1, 1, 1>, scalar_prefetch = 0 : i64, scratch_operands = 0 : i64, tpu.core_type = #tpu.core_type<tc>, window_params = [{transform_indices = @transform_0, window_bounds = array<i64: 16, 32>}, {transform_indices = @transform_1, window_bounds = array<i64: 1, 1, 16>}, {transform_indices = @transform_2, window_bounds = array<i64: 1, 8, 128>}]} {
    %c0_i32 = arith.constant 0 : i32
    %0 = arith.cmpi eq, %arg1, %c0_i32 : i32
    %c0_i32_0 = arith.constant 0 : i32
    %1 = arith.cmpi eq, %arg2, %c0_i32_0 : i32
    %2 = arith.andi %0, %1 : i1
    %3 = arith.extui %2 : i1 to i32
    %c0_i32_1 = arith.constant 0 : i32
    %4 = arith.cmpi ne, %3, %c0_i32_1 : i32
    scf.if %4 {
      %cst_25 = arith.constant 0.000000e+00 : f32
      %65 = vector.broadcast %cst_25 : f32 to vector<1x8x128xf32>
      %c0_26 = arith.constant 0 : index
      %c0_27 = arith.constant 0 : index
      %c0_28 = arith.constant 0 : index
      %66 = vector.load %arg5[%c0_26, %c0_27, %c0_28] : memref<1x8x128xf32, #tpu.memory_space<vmem>>, vector<1x8x128xf32>
      tpu.vector_store %arg5[%c0_26, %c0_27, %c0_28], %65 {strides = array<i32>} : memref<1x8x128xf32, #tpu.memory_space<vmem>>, vector<1x8x128xf32>,
    } else {
    }
    %c0 = arith.constant 0 : index
    %c0_2 = arith.constant 0 : index
    %5 = vector.load %arg3[%c0, %c0_2] : memref<16x32xf32, #tpu.memory_space<vmem>>, vector<16x32xf32>
    %c0_3 = arith.constant 0 : index
    %c0_4 = arith.constant 0 : index
    %c0_5 = arith.constant 0 : index
    %6 = vector.load %arg4[%c0_3, %c0_4, %c0_5] : memref<1x1x16xi32, #tpu.memory_space<vmem>>, vector<1x1x16xi32>
    %7 = vector.shape_cast %6 : vector<1x1x16xi32> to vector<1x16xi32>
    %8 = tpu.transpose %7, [1, 0] : vector<1x16xi32> -> vector<16x1xi32>
    %c32_i32 = arith.constant 32 : i32
    %9 = arith.muli %arg2, %c32_i32 : i32
    %10 = vector.broadcast %9 : i32 to vector<16x1xi32>
    %11 = arith.subi %8, %10 : vector<16x1xi32>
    %12 = tpu.iota {dimensions = array<i32: 1>} : vector<16x32xi32>
    %c1_i32 = arith.constant 1 : i32
    %13 = arith.muli %arg0, %c1_i32 : i32
    %14 = arith.addi %13, %arg1 : i32
    %c16_i32 = arith.constant 16 : i32
    %15 = arith.muli %14, %c16_i32 : i32
    %16 = tpu.iota {dimensions = array<i32: 0>} : vector<16x1xi32>
    %17 = vector.broadcast %15 : i32 to vector<16x1xi32>
    %18 = arith.addi %17, %16 : vector<16x1xi32>
    %c10_i32 = arith.constant 10 : i32
    %19 = vector.broadcast %c10_i32 : i32 to vector<16x1xi32>
    %20 = arith.cmpi slt, %18, %19 : vector<16x1xi32>
    %21 = vector.broadcast %11 : vector<16x1xi32> to vector<16x32xi32>
    %22 = arith.cmpi eq, %12, %21 : vector<16x32xi32>
    %cst = arith.constant 0.000000e+00 : f32
    %23 = vector.broadcast %cst : f32 to vector<16x32xf32>
    %24 = arith.select %22, %5, %23 : vector<16x32xi1>, vector<16x32xf32>
    %cst_6 = arith.constant dense<0.000000e+00> : vector<16xf32>
    %25 = vector.multi_reduction <add>, %24, %cst_6 [1] : vector<16x32xf32> to vector<16xf32>
    %26 = vector.shape_cast %25 : vector<16xf32> to vector<16x1xf32>
    %cst_7 = arith.constant dense<0.000000e+00> : vector<16xf32>
    %27 = vector.multi_reduction <add>, %5, %cst_7 [1] : vector<16x32xf32> to vector<16xf32>
    %28 = vector.shape_cast %27 : vector<16xf32> to vector<16x1xf32>
    %cst_8 = arith.constant 0.000000e+00 : f32
    %29 = vector.broadcast %cst_8 : f32 to vector<16x1xf32>
    %30 = arith.select %20, %26, %29 : vector<16x1xi1>, vector<16x1xf32>
    %31 = vector.shape_cast %30 : vector<16x1xf32> to vector<1x16x1xf32>
    %cst_9 = arith.constant dense<0.000000e+00> : vector<1xf32>
    %32 = vector.multi_reduction <add>, %31, %cst_9 [1, 2] : vector<1x16x1xf32> to vector<1xf32>
    %33 = vector.shape_cast %32 : vector<1xf32> to vector<1x1x1xf32>
    %34 = vector.extract %33[0, 0, 0] : f32 from vector<1x1x1xf32>
    %cst_10 = arith.constant 0.000000e+00 : f32
    %35 = vector.broadcast %cst_10 : f32 to vector<16x1xf32>
    %36 = arith.select %20, %28, %35 : vector<16x1xi1>, vector<16x1xf32>
    %37 = vector.shape_cast %36 : vector<16x1xf32> to vector<1x16x1xf32>
    %cst_11 = arith.constant dense<0.000000e+00> : vector<1xf32>
    %38 = vector.multi_reduction <add>, %37, %cst_11 [1, 2] : vector<1x16x1xf32> to vector<1xf32>
    %39 = vector.shape_cast %38 : vector<1xf32> to vector<1x1x1xf32>
    %40 = vector.extract %39[0, 0, 0] : f32 from vector<1x1x1xf32>
    %cst_12 = arith.constant 0.899999976 : f32
    %41 = arith.mulf %cst_12, %34 : f32
    %cst_13 = arith.constant 3.125000e-03 : f32
    %42 = arith.mulf %cst_13, %40 : f32
    %43 = arith.addf %41, %42 : f32
    %cst_14 = arith.constant 0.000000e+00 : f32
    %44 = arith.subf %cst_14, %43 : f32
    %cst_15 = arith.constant dense<0xFF800000> : vector<16xf32>
    %45 = vector.multi_reduction <maximumf>, %5, %cst_15 [1] : vector<16x32xf32> to vector<16xf32>
    %46 = vector.shape_cast %45 : vector<16xf32> to vector<16x1xf32>
    %47 = vector.broadcast %46 : vector<16x1xf32> to vector<16x32xf32>
    %48 = arith.subf %5, %47 : vector<16x32xf32>
    %49 = math.exp %48 : vector<16x32xf32>
    %cst_16 = arith.constant dense<0.000000e+00> : vector<16xf32>
    %50 = vector.multi_reduction <add>, %49, %cst_16 [1] : vector<16x32xf32> to vector<16xf32>
    %51 = vector.shape_cast %50 : vector<16xf32> to vector<16x1xf32>
    %52 = math.log %51 : vector<16x1xf32>
    %53 = arith.addf %46, %52 : vector<16x1xf32>
    %c0_17 = arith.constant 0 : index
    %c0_18 = arith.constant 0 : index
    %c0_19 = arith.constant 0 : index
    %54 = vector.load %arg5[%c0_17, %c0_18, %c0_19] : memref<1x8x128xf32, #tpu.memory_space<vmem>>, vector<1x8x128xf32>
    %cst_20 = arith.constant 0.000000e+00 : f32
    %55 = vector.broadcast %cst_20 : f32 to vector<16x1xf32>
    %56 = arith.select %20, %53, %55 : vector<16x1xi1>, vector<16x1xf32>
    %57 = vector.shape_cast %56 : vector<16x1xf32> to vector<1x16x1xf32>
    %cst_21 = arith.constant dense<0.000000e+00> : vector<1xf32>
    %58 = vector.multi_reduction <add>, %57, %cst_21 [1, 2] : vector<1x16x1xf32> to vector<1xf32>
    %59 = vector.shape_cast %58 : vector<1xf32> to vector<1x1x1xf32>
    %60 = vector.extract %59[0, 0, 0] : f32 from vector<1x1x1xf32>
    %61 = arith.addf %44, %60 : f32
    %62 = vector.broadcast %61 : f32 to vector<1x8x128xf32>
    %63 = arith.addf %54, %62 : vector<1x8x128xf32>
    %c0_22 = arith.constant 0 : index
    %c0_23 = arith.constant 0 : index
    %c0_24 = arith.constant 0 : index
    %64 = vector.load %arg5[%c0_22, %c0_23, %c0_24] : memref<1x8x128xf32, #tpu.memory_space<vmem>>, vector<1x8x128xf32>
    tpu.vector_store %arg5[%c0_22, %c0_23, %c0_24], %63 {strides = array<i32>} : memref<1x8x128xf32, #tpu.memory_space<vmem>>, vector<1x8x128xf32>,
    return
  }
  func.func @transform_0(%arg0: i32, %arg1: i32, %arg2: i32) -> (i32, i32) {
    %c1_i32 = arith.constant 1 : i32
    %0 = arith.muli %arg0, %c1_i32 : i32
    %1 = arith.addi %0, %arg1 : i32
    %c0_i32 = arith.constant 0 : i32
    return %1, %arg2 : i32, i32
  }
  func.func @transform_1(%arg0: i32, %arg1: i32, %arg2: i32) -> (i32, i32, i32) {
    %c1_i32 = arith.constant 1 : i32
    %0 = arith.muli %arg0, %c1_i32 : i32
    %1 = arith.addi %0, %arg1 : i32
    %c0_i32 = arith.constant 0 : i32
    %c0_i32_0 = arith.constant 0 : i32
    %c0_i32_1 = arith.constant 0 : i32
    return %1, %c0_i32, %c0_i32_0 : i32, i32, i32
  }
  func.func @transform_2(%arg0: i32, %arg1: i32, %arg2: i32) -> (i32, i32, i32) {
    %c0_i32 = arith.constant 0 : i32
    %c0_i32_0 = arith.constant 0 : i32
    %c0_i32_1 = arith.constant 0 : i32
    return %arg0, %c0_i32, %c0_i32_0 : i32, i32, i32
  }
}

</mosaic_0001>

<bundles_post_ra>
// kernel: tpu_custom_call.1
= control target key start
LH: loop header
LB: loop body
LE: loop exit
PB: predicated region body
PF: predicated region fallthrough
CT: control target
= control target key end

     0   :  { %7 = vsyncpa [#allocation3], 0  ;;  %s324_s0 = inlined_call_operand.hbm [shape: f32[10,32], index: 0, kind: input, shape index: {}]   ;;  %s325_s1 = inlined_call_operand.vmem [shape: s32[1,1,16], index: 1, kind: input, shape index: {}]   ;;  %s326_s2 = inlined_call_operand.hbm [shape: f32[1,8,128], index: 2, kind: output, shape index: {}]  }
   0x1   :  { %8 = vsyncpa [#allocation4], 0  ;;  %s287_s9 = smov [#allocation2]  }
   0x2   :  { %s18_s10 = sshll.u32 %s287_s9, 4  ;;  %s19_s10 = int_to_ptr.vmem [resolvable:$true] %s18_s10 }
   0x3   :  { %s251_s11 = scalar_lea.vmem %s19_s10, 256  ;;  %p256_p1 = scmp.lt.s32.totalorder %s19_s10, %s19_s10 }
   0x4   :  { %p252_p0 = scmp.ne.s32.totalorder %s19_s10, %s251_s11  ;;  %p257_p2 = scmp.lt.s32.totalorder %s251_s11, %s251_s11 }
   0x6   :  { %p258_p3 = por %p257_p2, %p256_p1 }
   0x8   :  { %p259_p4 = pnand %p258_p3, %p252_p0 }
   0xa   :  { %262 = shalt.err (!%p259_p4)
}
   0xb   :  { %s288_s12 = smov 128   ;;  %s289_s13 = smov 8  }
   0xc   :  { %24 = dma.hbm_to_vmem [thread:$0]  %s324_s0, 256, %s19_s10, [#allocation3], %s288_s12, %s288_s12, %s289_s13  }
   0xd   :  { %283 = dma.done.wait [#allocation3], 256  }
   0xe   :  { %284 = vsyncadd [#allocation3], 4294967040  ;;  %vm114_vm0 = vcmask 261120   ;;  %v290_v0 = vmov 0   ;;  %v55_v1 = vld [vmem:[%s325_s1] sm:$0x1]  ;;  %v92_v19 = vlaneseq }
   0xf   :  { %233 = vset.pattern.permute.xlu1 %v290_v0  ;;  %v53_v2 = vld [vmem:[#allocation2] sm:$0xff]  ;;  %56 = vxpose.xlu0.b32.start.end [1/1] (short) (narrow) %v55_v1, 16  ;;  %v54_v4 = vld [vmem:[#allocation2 + $0x8] sm:$0xff]  ;;  %vm129_vm4 = vcmask 7168   ;;  %s291_s24 = smov [#allocation5]  }
  0x10   :  { %v160_v3 = vsel %vm114_vm0, %v53_v2, -inf  ;;  %v163_v5 = vsel %vm114_vm0, %v54_v4, -inf  ;;  %v124_v13 = vsel %vm114_vm0, %v54_v4, 0.0  ;;  %v93_v20 = vand.u32 127, %v92_v19  ;;  %s209_s25 = sshll.u32 %s291_s24, 4  ;;  %s210_s25 = int_to_ptr.vmem [resolvable:$true] %s209_s25 }
  0x11   :  { %161 = vmax.xlane.f32.xlu1 %v160_v3  ;;  %v121_v25 = vsel %vm114_vm0, %v53_v2, 0.0  ;;  %v97_v30 = vshrl.u32 %v92_v19, 7  ;;  %s263_s26 = scalar_lea.vmem %s210_s25, 128  ;;  %p268_p6 = scmp.lt.s32.totalorder %s210_s25, %s210_s25 }
  0x12   :  { %p264_p5 = scmp.ne.s32.totalorder %s210_s25, %s263_s26  ;;  %p269_p7 = scmp.lt.s32.totalorder %s263_s26, %s263_s26 }
  0x13   :  { %v98_v34 = vadd.s32 8, %v97_v30 }
  0x14   :  { %p270_p8 = por %p269_p7, %p268_p6 }
  0x15   :  { %vm103_vm3 = vcmp.lt.s32.totalorder %v98_v34, 10 }
  0x16   :  { %p271_p9 = pnand %p270_p8, %p264_p5 }
  0x38   :  { %234 = vset.pattern.permute.xlu0 %v290_v0 }
  0x40   :  { %164 = vmax.xlane.f32.xlu0 %v163_v5 }
  0x8b   :  { %v72_v6 = vpop.trf.xlu0 }
  0x8f   :  { %v73_v7 = vpop.trf.xlu0 }
  0x90   :  { %108 = vperm.xlu1 %233, %v73_v7  }
  0x94   :  { %105 = vperm.xlu1 %233, %v72_v6  }
  0x9a   :  { %v162_v8 = vpop.xlane.xlu1 %161 }
  0x9b   :  { %v166_v9 = vsub.f32 %v53_v2, %v162_v8 }
  0x9d   :  { %v168_v10 = vmul.f32 1.442695, %v166_v9 }
  0x9f   :  { %235 = vpow2.f32 %v168_v10 }
  0xac   :  { %v236_v11 = vpop.eup %235 }
  0xad   :  { %v172_v12 = vsel %vm114_vm0, %v236_v11, 0.0 }
  0xae   :  { %173 = vadd.xlane.f32.xlu0 %v172_v12 }
  0xb2   :  { %125 = vadd.xlane.f32.xlu0 %v124_v13 }
  0xc9   :  { %v165_v14 = vpop.xlane.xlu0 %164 }
  0xca   :  { %v167_v15 = vsub.f32 %v54_v4, %v165_v14 }
  0xcc   :  { %v170_v16 = vmul.f32 1.442695, %v167_v15 }
  0xce   :  { %237 = vpow2.f32 %v170_v16 }
  0xdb   :  { %v238_v17 = vpop.eup %237 }
  0xdc   :  { %v175_v18 = vsel %vm114_vm0, %v238_v17, 0.0 }
  0xdd   :  { %176 = vadd.xlane.f32.xlu1 %v175_v18 }
 0x10b   :  { %v109_v21 = vpop.permute.xlu1 %108 }
 0x10c   :  { %vm111_vm1 = vcmp.eq.s32.totalorder %v93_v20, %v109_v21 }
 0x10d   :  { %v113_v22 = vsel %vm111_vm1, %v54_v4, 0.0 }
 0x10e   :  { %v118_v23 = vsel %vm114_vm0, %v113_v22, 0.0 }
 0x10f   :  { %119 = vadd.xlane.f32.xlu0 %v118_v23  ;;  %v106_v24 = vpop.permute.xlu1 %105 }
 0x110   :  { %vm110_vm2 = vcmp.eq.s32.totalorder %v93_v20, %v106_v24 }
 0x111   :  { %v112_v26 = vsel %vm110_vm2, %v53_v2, 0.0 }
 0x112   :  { %v115_v27 = vsel %vm114_vm0, %v112_v26, 0.0 }
 0x113   :  { %116 = vadd.xlane.f32.xlu1 %v115_v27  ;;  %122 = vadd.xlane.f32.xlu0 %v121_v25 }
 0x137   :  { %v174_v29 = vpop.xlane.xlu0 %173 }
 0x13b   :  { %v126_v32 = vpop.xlane.xlu0 %125 }
 0x13c   :  { %v143_v39 = vsel %vm103_vm3, %v126_v32, 0.0 }
 0x13d   :  { %v145_v41 = vsel %vm129_vm4, %v143_v39, 0.0 }
 0x166   :  { %v177_v28 = vpop.xlane.xlu1 %176 }
 0x167   :  { %239 = vlog2.f32 %v177_v28 }
 0x168   :  { %241 = vlog2.f32 %v174_v29 }
 0x174   :  { %v240_v31 = vpop.eup %239 }
 0x175   :  { %v181_v33 = vmul.f32 0.6931472, %v240_v31  ;;  %v242_v35 = vpop.eup %241 }
 0x176   :  { %v179_v38 = vmul.f32 0.6931472, %v242_v35 }
 0x177   :  { %v183_v37 = vadd.f32 %v181_v33, %v165_v14 }
 0x178   :  { %v182_v48 = vadd.f32 %v179_v38, %v162_v8 }
 0x179   :  { %v186_v44 = vsel %vm103_vm3, %v183_v37, 0.0 }
 0x17a   :  { %v188_v51 = vsel %vm129_vm4, %v186_v44, 0.0  ;;  %v187_v52 = vsel %vm129_vm4, %v182_v48, 0.0 }
 0x17b   :  { %v189_v53 = vadd.f32 %v188_v51, %v187_v52 }
 0x198   :  { %v120_v36 = vpop.xlane.xlu0 %119 }
 0x199   :  { %v128_v40 = vsel %vm103_vm3, %v120_v36, 0.0 }
 0x19a   :  { %v131_v45 = vsel %vm129_vm4, %v128_v40, 0.0 }
 0x19c   :  { %v117_v42 = vpop.xlane.xlu1 %116  ;;  %v123_v43 = vpop.xlane.xlu0 %122 }
 0x19d   :  { %v130_v46 = vsel %vm129_vm4, %v117_v42, 0.0  ;;  %v144_v47 = vsel %vm129_vm4, %v123_v43, 0.0 }
 0x19e   :  { %v132_v49 = vadd.f32 %v131_v45, %v130_v46  ;;  %v146_v50 = vadd.f32 %v145_v41, %v144_v47 }
 0x1a0   :  { %133 = vadd.xlane.f32.xlu1 %v132_v49  ;;  %147 = vadd.xlane.f32.xlu0 %v146_v50 }
 0x1a4   :  { %190 = vadd.xlane.f32.xlu1 %v189_v53 }
 0x229   :  { %v134_v54 = vpop.xlane.xlu1 %133  ;;  %v148_v55 = vpop.xlane.xlu0 %147 }
 0x22a   :  { %v135_v56 = vrot.slane %v134_v54, 4  ;;  %v149_v57 = vrot.slane %v148_v55, 4 }
 0x22c   :  { %v136_v58 = vadd.f32 %v135_v56, %v134_v54  ;;  %v150_v59 = vadd.f32 %v149_v57, %v148_v55 }
 0x22d   :  { %v191_v60 = vpop.xlane.xlu1 %190 }
 0x22e   :  { %v137_v61 = vrot.slane %v136_v58, 2  ;;  %v151_v62 = vrot.slane %v150_v59, 2  ;;  %v192_v63 = vrot.slane %v191_v60, 4 }
 0x230   :  { %v152_v0 = vadd.f32 %v151_v62, %v150_v59  ;;  %v193_v1 = vadd.f32 %v192_v63, %v191_v60  ;;  %v138_v2 = vadd.f32 %v137_v61, %v136_v58 }
 0x232   :  { %v194_v3 = vrot.slane %v193_v1, 2  ;;  %v139_v4 = vrot.slane %v138_v2, 1  ;;  %v153_v5 = vrot.slane %v152_v0, 1 }
 0x234   :  { %v195_v6 = vadd.f32 %v194_v3, %v193_v1  ;;  %v140_v7 = vadd.f32 %v139_v4, %v138_v2  ;;  %v154_v8 = vadd.f32 %v153_v5, %v152_v0 }
 0x236   :  { %221 = vpush %v140_v7  ;;  %v196_v9 = vrot.slane %v195_v6, 1 }
 0x237   :  { %223 = vpush %v154_v8 }
 0x238   :  { %v197_v10 = vadd.f32 %v196_v9, %v195_v6 }
 0x23a   :  { %225 = vpush %v197_v10 }
 0x267   :  { %s222_s0 = spop %221 }
 0x268   :  { %s156_s1 = smul.f32 0.9, %s222_s0  ;;  %s224_s18 = spop %223 }
 0x269   :  { %s157_s19 = smul.f32 0.003125, %s224_s18 }
 0x26b   :  { %s158_s20 = sadd.f32 %s157_s19, %s156_s1  ;;  %s226_s22 = spop %225 }
 0x26d   :  { %s159_s21 = ssub.f32 0.0, %s158_s20 }
 0x26f   :  { %s199_s23 = sadd.f32 %s226_s22, %s159_s21 }
 0x271   :  { %v200_v11 = vstv %s199_s23 }
 0x272   :  { %202 = vst [vmem:[#allocation5] sm:$0xff] %v200_v11 }
 0x273   :  { %274 = shalt.err (!%p271_p9)
}
 0x274   :  { %212 = dma.vmem_to_hbm [thread:$0]  %s210_s25, 128, %s326_s2, [#allocation4]  }
 0x275   :  { %285 = dma.done.wait [#allocation4], 128  }
 0x276   :  { %286 = vsyncadd [#allocation4], 4294967168 }
 0x277   :  { %216 = vsyncpa [#allocation3], 1 }
 0x278   :  { %217 = vsyncpa [#allocation4], 1 }

</bundles_post_ra>
